<compile_context>
chip_gen: v5e
topology: v5e:2x2
jax: 0.10.0
libtpu: 0.0.40
codegen_flags: <defaults>
</compile_context>

<pallas_src>
import functools

import jax
import jax.numpy as jnp
import numpy as np
from jax.experimental import pallas as pl
from jax.experimental.pallas import tpu as pltpu

# ---- model hyper-parameters (defaults of NeRFSmall_c.__init__) --------------
INPUT_CH = 3
HIDDEN_DIM = 64
GEO_FEAT_DIM = 15
HIDDEN_DIM_COLOR = 16
SIGMA_OUT = 1 + GEO_FEAT_DIM           # 16
COLOR_OUT = 1

TM_DEFAULT = 8192                      # points per grid step (lane axis); tunable
                                       # (sweep 4096-16384; keep cdiv(N, TM) >= ~4
                                       #  on v7x so both TensorCores get work)


def _nerf_c_kernel(x_ref,              # (INPUT_CH, TM)                 f32 (feature-major)
                   w0_ref,             # (HIDDEN_DIM, INPUT_CH)         f32 (VPU layer)
                   w1_ref,             # (HIDDEN_DIM, HIDDEN_DIM)       compute dtype
                   w2_ref,             # (SIGMA_OUT, HIDDEN_DIM)        compute dtype
                   wc0_ref,            # (HIDDEN_DIM_COLOR, SIGMA_OUT)  compute dtype (col 0 = 0)
                   bc0_ref,            # (HIDDEN_DIM_COLOR, 1)          f32
                   wc1_ref,            # (HIDDEN_DIM_COLOR, 1)          f32 (VPU head)
                   bc1_ref,            # (1, 1)                         f32
                   out_ref):           # (2, TM) f32 out: row 0 = sigma, row 1 = color
    cdt = w1_ref.dtype

    x = x_ref[...]                     # (3, TM) f32
    w0 = w0_ref[...]                   # (64, 3) f32

    # ---- sigma net layer 0: K=3, so do it on the VPU (3 broadcast MACs) -----
    h = (w0[:, 0:1] * x[0:1, :]
         + w0[:, 1:2] * x[1:2, :]
         + w0[:, 2:3] * x[2:3, :])                                     # (64, TM) f32
    h = jnp.maximum(h, 0.0).astype(cdt)                                # fused ReLU + cast

    # ---- sigma net layers 1..2: MXU matmuls, f32 accumulation ----------------
    h = jnp.dot(w1_ref[...], h, preferred_element_type=jnp.float32)    # (64, TM) f32
    h = jnp.maximum(h, 0.0).astype(cdt)                                # fused ReLU + cast
    h2 = jnp.dot(w2_ref[...], h, preferred_element_type=jnp.float32)   # (16, TM) f32
    h2 = jnp.maximum(h2, 0.0)          # ReLU after the LAST sigma layer too, per the spec.

    sigma_row = h2[0:1, :]                                             # (1, TM) f32

    # ---- color net: input is h2[1:, :] (geo feat).  The slice is folded into
    # a zero first column of wc0, so the full (16, TM) h2 feeds straight in. ---
    c = jnp.dot(wc0_ref[...], h2.astype(cdt), preferred_element_type=jnp.float32)
    c = jnp.maximum(c + bc0_ref[...], 0.0)                             # (16, TM) f32

    # Final 16->1 head on the VPU/XLU (broadcast mul + sublane reduce) instead
    # of a push-dominated (16, TM)-LHS MXU matmul.
    color_row = jnp.sum(c * wc1_ref[...], axis=0, keepdims=True) + bc1_ref[...]  # (1, TM)

    # Single lane-dense, unmasked store of both outputs.
    out_ref[...] = jnp.concatenate([sigma_row, color_row], axis=0).astype(out_ref.dtype)


def nerf_small_c_forward_t(x_t, params, *, tm=TM_DEFAULT,
                           compute_dtype=jnp.bfloat16):
    """Preferred (feature-major) entry point.  x_t: (INPUT_CH, N) f32.

    Returns a single (2, N) float32 array: row 0 = sigma, row 1 = color.
    Feeding (3, N) directly avoids a standalone HBM transpose in the caller.
    """
    assert tm % 128 == 0, "point tile must be a multiple of 128 (lane axis)"
    assert x_t.shape[0] == INPUT_CH
    n = x_t.shape[1]

    # Weights in torch orientation (out_features, in_features); MXU operands are
    # pre-cast to the compute dtype here (once), not per grid step.
    w0 = params["w0"].astype(jnp.float32)                              # (64, 3)  VPU layer
    w1 = params["w1"].astype(compute_dtype)                            # (64, 64)
    w2 = params["w2"].astype(compute_dtype)                            # (16, 64)
    # Zero first column (sigma channel) absorbs the h[..., 1:] slice.
    wc0p = jnp.pad(params["wc0"], ((0, 0), (1, 0))).astype(compute_dtype)  # (16, 16)
    bc0 = params["bc0"].astype(jnp.float32).reshape(HIDDEN_DIM_COLOR, 1)
    # Final head stays f32 and column-shaped for the VPU broadcast-MAC path.
    wc1c = params["wc1"].astype(jnp.float32).reshape(HIDDEN_DIM_COLOR, 1)  # (16, 1)
    bc1 = params["bc1"].astype(jnp.float32).reshape(COLOR_OUT, 1)          # (1, 1)

    def resident(arr):
        # Whole-array block with a constant index_map: stays in VMEM, no re-DMA
        # across grid steps.
        return pl.BlockSpec(arr.shape, lambda i: (0,) * arr.ndim)

    grid = (pl.cdiv(n, tm),)   # no wrapper-side padding; tail block is masked by Pallas

    cp_kwargs = dict(dimension_semantics=("parallel",))
    if tm > 8192:
        # Very large tiles can exceed v5e's 16 MiB scoped-VMEM default; raise the
        # cap (still leaves headroom under v7x's 64 MiB physical VMEM).
        cp_kwargs["vmem_limit_bytes"] = 48 * 1024 * 1024

    out = pl.pallas_call(
        _nerf_c_kernel,
        out_shape=jax.ShapeDtypeStruct((2, n), jnp.float32),
        grid_spec=pltpu.PrefetchScalarGridSpec(
            num_scalar_prefetch=0,
            grid=grid,
            in_specs=[
                pl.BlockSpec((INPUT_CH, tm), lambda i: (0, i)),
                resident(w0), resident(w1), resident(w2),
                resident(wc0p), resident(bc0), resident(wc1c), resident(bc1),
            ],
            out_specs=pl.BlockSpec((2, tm), lambda i: (0, i)),
        ),
        compiler_params=pltpu.CompilerParams(**cp_kwargs),
    )(x_t, w0, w1, w2, wc0p, bc0, wc1c, bc1)
    return out


def nerf_small_c_forward(x, params, *, tm=TM_DEFAULT, compute_dtype=jnp.bfloat16):
    """x: (N, INPUT_CH) float32 (points-major, like the PyTorch module).

    Returns (sigma (N, 1), color (N, 1)).

    NOTE: this wrapper pays one XLA transpose; callers that can supply (3, N)
    feature-major data should use nerf_small_c_forward_t directly (or fuse the
    transpose into the upstream producer).
    """
    assert x.ndim == 2 and x.shape[1] == INPUT_CH
    n = x.shape[0]
    x_t = jnp.asarray(x, jnp.float32).T
    out = nerf_small_c_forward_t(x_t, params, tm=tm, compute_dtype=compute_dtype)
    # (2, N) -> two (N, 1): contiguous row slices + metadata reshape.
    return out[0].reshape(n, 1), out[1].reshape(n, 1)


def init_params(key):
    """Synthetic weights with the exact shapes / init law of the PyTorch module.

    Stored in torch orientation (out_features, in_features).  The module's
    self.rgb parameter is unused in forward() and is omitted.
    """
    ks = jax.random.split(key, 7)

    def u(k, shape, fan_in):
        bound = 1.0 / np.sqrt(fan_in)
        return jax.random.uniform(k, shape, jnp.float32, -bound, bound)

    return {
        # sigma_net: Linear(3,64), Linear(64,64), Linear(64,16), all bias=False
        "w0": u(ks[0], (HIDDEN_DIM, INPUT_CH), INPUT_CH),
        "w1": u(ks[1], (HIDDEN_DIM, HIDDEN_DIM), HIDDEN_DIM),
        "w2": u(ks[2], (SIGMA_OUT, HIDDEN_DIM), HIDDEN_DIM),
        # color_net: Linear(15,16,bias=True), Linear(16,1,bias=True)
        "wc0": u(ks[3], (HIDDEN_DIM_COLOR, GEO_FEAT_DIM), GEO_FEAT_DIM),
        "bc0": u(ks[4], (HIDDEN_DIM_COLOR,), GEO_FEAT_DIM),
        "wc1": u(ks[5], (COLOR_OUT, HIDDEN_DIM_COLOR), HIDDEN_DIM_COLOR),
        "bc1": u(ks[6], (COLOR_OUT,), HIDDEN_DIM_COLOR),
    }


def reference_forward(x, p):
    """Pure-JAX reference matching NeRFSmall_c.forward exactly (f32)."""
    mm = functools.partial(jnp.dot, precision=jax.lax.Precision.HIGHEST)
    h = x
    h = jax.nn.relu(mm(h, p["w0"].T))
    h = jax.nn.relu(mm(h, p["w1"].T))
    h = jax.nn.relu(mm(h, p["w2"].T))          # relu after the last sigma layer too
    sigma = h[..., :1]
    c = mm(h[..., 1:], p["wc0"].T) + p["bc0"]
    c = jax.nn.relu(c)
    c = mm(c, p["wc1"].T) + p["bc1"]
    return sigma, c


if __name__ == "__main__":
    key = jax.random.PRNGKey(0)
    kx, kp = jax.random.split(key)

    N = 1000   # small, and deliberately NOT a multiple of the point tile
    x = jax.random.normal(kx, (N, INPUT_CH), jnp.float32)
    params = init_params(kp)

    sigma_ref, color_ref = reference_forward(x, params)

    # 1) Exact-semantics check: f32 MXU path, small tile -> multi-step grid
    #    plus a masked partial tail block.
    s32, c32 = nerf_small_c_forward(x, params, tm=256, compute_dtype=jnp.float32)
    jax.block_until_ready((s32, c32))
    np.testing.assert_allclose(np.asarray(s32), np.asarray(sigma_ref),
                               rtol=1e-4, atol=1e-4)
    np.testing.assert_allclose(np.asarray(c32), np.asarray(color_ref),
                               rtol=1e-4, atol=1e-4)

    # 2) Fast path via the feature-major entry point (default big tile + bf16
    #    MXU operands, no wrapper transpose); looser tolerance for bf16.
    x_t = jnp.asarray(x, jnp.float32).T            # stand-in for a (3, N) producer
    out = nerf_small_c_forward_t(x_t, params)
    jax.block_until_ready(out)
    assert out.shape == (2, N)
    np.testing.assert_allclose(np.asarray(out[0]), np.asarray(sigma_ref[:, 0]),
                               rtol=1e-1, atol=5e-2)
    np.testing.assert_allclose(np.asarray(out[1]), np.asarray(color_ref[:, 0]),
                               rtol=1e-1, atol=5e-2)

    # 3) Points-major compatibility wrapper on the fast path (shape check).
    sigma, color = nerf_small_c_forward(x, params)
    jax.block_until_ready((sigma, color))
    assert sigma.shape == (N, 1) and color.shape == (N, 1)
    np.testing.assert_allclose(np.asarray(sigma), np.asarray(sigma_ref),
                               rtol=1e-1, atol=5e-2)
    np.testing.assert_allclose(np.asarray(color), np.asarray(color_ref),
                               rtol=1e-1, atol=5e-2)

    print("KERNEL_OK")
</pallas_src>

<mosaic_0001>
module attributes {stable_mosaic.version = 11 : i64} {
  func.func @_nerf_c_kernel(%arg0: i32, %arg1: memref<3x256xf32, #tpu.memory_space<vmem>>, %arg2: memref<64x3xf32, #tpu.memory_space<vmem>>, %arg3: memref<64x64xf32, #tpu.memory_space<vmem>>, %arg4: memref<16x64xf32, #tpu.memory_space<vmem>>, %arg5: memref<16x16xf32, #tpu.memory_space<vmem>>, %arg6: memref<16x1xf32, #tpu.memory_space<vmem>>, %arg7: memref<16x1xf32, #tpu.memory_space<vmem>>, %arg8: memref<1x1xf32, #tpu.memory_space<vmem>>, %arg9: memref<2x256xf32, #tpu.memory_space<vmem>>) attributes {dimension_semantics = [#tpu.dimension_semantics<parallel>], iteration_bounds = array<i64: 4>, scalar_prefetch = 0 : i64, scratch_operands = 0 : i64, tpu.core_type = #tpu.core_type<tc>, window_params = [{transform_indices = @transform_0, window_bounds = array<i64: 3, 256>}, {pipeline_mode = #tpu.pipeline_mode<synchronous>, transform_indices = @transform_1, window_bounds = array<i64: 64, 3>}, {pipeline_mode = #tpu.pipeline_mode<synchronous>, transform_indices = @transform_2, window_bounds = array<i64: 64, 64>}, {pipeline_mode = #tpu.pipeline_mode<synchronous>, transform_indices = @transform_3, window_bounds = array<i64: 16, 64>}, {pipeline_mode = #tpu.pipeline_mode<synchronous>, transform_indices = @transform_4, window_bounds = array<i64: 16, 16>}, {pipeline_mode = #tpu.pipeline_mode<synchronous>, transform_indices = @transform_5, window_bounds = array<i64: 16, 1>}, {pipeline_mode = #tpu.pipeline_mode<synchronous>, transform_indices = @transform_6, window_bounds = array<i64: 16, 1>}, {pipeline_mode = #tpu.pipeline_mode<synchronous>, transform_indices = @transform_7, window_bounds = array<i64: 1, 1>}, {transform_indices = @transform_8, window_bounds = array<i64: 2, 256>}]} {
    %c0 = arith.constant 0 : index
    %c0_0 = arith.constant 0 : index
    %0 = vector.load %arg1[%c0, %c0_0] : memref<3x256xf32, #tpu.memory_space<vmem>>, vector<3x256xf32>
    %c0_1 = arith.constant 0 : index
    %c0_2 = arith.constant 0 : index
    %1 = vector.load %arg2[%c0_1, %c0_2] : memref<64x3xf32, #tpu.memory_space<vmem>>, vector<64x3xf32>
    %2 = vector.extract_strided_slice %1 {offsets = [0, 0], sizes = [64, 1], strides = [1, 1]} : vector<64x3xf32> to vector<64x1xf32>
    %3 = vector.extract_strided_slice %0 {offsets = [0, 0], sizes = [1, 256], strides = [1, 1]} : vector<3x256xf32> to vector<1x256xf32>
    %4 = vector.broadcast %2 : vector<64x1xf32> to vector<64x256xf32>
    %5 = vector.broadcast %3 : vector<1x256xf32> to vector<64x256xf32>
    %6 = arith.mulf %4, %5 : vector<64x256xf32>
    %7 = vector.extract_strided_slice %1 {offsets = [0, 1], sizes = [64, 1], strides = [1, 1]} : vector<64x3xf32> to vector<64x1xf32>
    %8 = vector.extract_strided_slice %0 {offsets = [1, 0], sizes = [1, 256], strides = [1, 1]} : vector<3x256xf32> to vector<1x256xf32>
    %9 = vector.broadcast %7 : vector<64x1xf32> to vector<64x256xf32>
    %10 = vector.broadcast %8 : vector<1x256xf32> to vector<64x256xf32>
    %11 = arith.mulf %9, %10 : vector<64x256xf32>
    %12 = arith.addf %6, %11 : vector<64x256xf32>
    %13 = vector.extract_strided_slice %1 {offsets = [0, 2], sizes = [64, 1], strides = [1, 1]} : vector<64x3xf32> to vector<64x1xf32>
    %14 = vector.extract_strided_slice %0 {offsets = [2, 0], sizes = [1, 256], strides = [1, 1]} : vector<3x256xf32> to vector<1x256xf32>
    %15 = vector.broadcast %13 : vector<64x1xf32> to vector<64x256xf32>
    %16 = vector.broadcast %14 : vector<1x256xf32> to vector<64x256xf32>
    %17 = arith.mulf %15, %16 : vector<64x256xf32>
    %18 = arith.addf %12, %17 : vector<64x256xf32>
    %cst = arith.constant 0.000000e+00 : f32
    %19 = vector.broadcast %cst : f32 to vector<64x256xf32>
    %20 = arith.maximumf %18, %19 : vector<64x256xf32>
    %c0_3 = arith.constant 0 : index
    %c0_4 = arith.constant 0 : index
    %21 = vector.load %arg3[%c0_3, %c0_4] : memref<64x64xf32, #tpu.memory_space<vmem>>, vector<64x64xf32>
    %cst_5 = arith.constant dense<0.000000e+00> : vector<64x256xf32>
    %22 = tpu.matmul %21, %20, %cst_5 {dimension_numbers = #tpu.dot_dimension_numbers<[1], [0], [0], [1], [0, 0, 1, 1], [], []>} : vector<64x64xf32>, vector<64x256xf32>, vector<64x256xf32> -> vector<64x256xf32>
    %cst_6 = arith.constant 0.000000e+00 : f32
    %23 = vector.broadcast %cst_6 : f32 to vector<64x256xf32>
    %24 = arith.maximumf %22, %23 : vector<64x256xf32>
    %c0_7 = arith.constant 0 : index
    %c0_8 = arith.constant 0 : index
    %25 = vector.load %arg4[%c0_7, %c0_8] : memref<16x64xf32, #tpu.memory_space<vmem>>, vector<16x64xf32>
    %cst_9 = arith.constant dense<0.000000e+00> : vector<16x256xf32>
    %26 = tpu.matmul %25, %24, %cst_9 {dimension_numbers = #tpu.dot_dimension_numbers<[1], [0], [0], [1], [0, 0, 1, 1], [], []>} : vector<16x64xf32>, vector<64x256xf32>, vector<16x256xf32> -> vector<16x256xf32>
    %cst_10 = arith.constant 0.000000e+00 : f32
    %27 = vector.broadcast %cst_10 : f32 to vector<16x256xf32>
    %28 = arith.maximumf %26, %27 : vector<16x256xf32>
    %29 = vector.extract_strided_slice %28 {offsets = [0, 0], sizes = [1, 256], strides = [1, 1]} : vector<16x256xf32> to vector<1x256xf32>
    %c0_11 = arith.constant 0 : index
    %c0_12 = arith.constant 0 : index
    %30 = vector.load %arg5[%c0_11, %c0_12] : memref<16x16xf32, #tpu.memory_space<vmem>>, vector<16x16xf32>
    %cst_13 = arith.constant dense<0.000000e+00> : vector<16x256xf32>
    %31 = tpu.matmul %30, %28, %cst_13 {dimension_numbers = #tpu.dot_dimension_numbers<[1], [0], [0], [1], [0, 0, 1, 1], [], []>} : vector<16x16xf32>, vector<16x256xf32>, vector<16x256xf32> -> vector<16x256xf32>
    %c0_14 = arith.constant 0 : index
    %c0_15 = arith.constant 0 : index
    %32 = vector.load %arg6[%c0_14, %c0_15] : memref<16x1xf32, #tpu.memory_space<vmem>>, vector<16x1xf32>
    %33 = vector.broadcast %32 : vector<16x1xf32> to vector<16x256xf32>
    %34 = arith.addf %31, %33 : vector<16x256xf32>
    %cst_16 = arith.constant 0.000000e+00 : f32
    %35 = vector.broadcast %cst_16 : f32 to vector<16x256xf32>
    %36 = arith.maximumf %34, %35 : vector<16x256xf32>
    %c0_17 = arith.constant 0 : index
    %c0_18 = arith.constant 0 : index
    %37 = vector.load %arg7[%c0_17, %c0_18] : memref<16x1xf32, #tpu.memory_space<vmem>>, vector<16x1xf32>
    %38 = vector.broadcast %37 : vector<16x1xf32> to vector<16x256xf32>
    %39 = arith.mulf %36, %38 : vector<16x256xf32>
    %cst_19 = arith.constant dense<0.000000e+00> : vector<256xf32>
    %40 = vector.multi_reduction <add>, %39, %cst_19 [0] : vector<16x256xf32> to vector<256xf32>
    %41 = vector.shape_cast %40 : vector<256xf32> to vector<1x256xf32>
    %c0_20 = arith.constant 0 : index
    %c0_21 = arith.constant 0 : index
    %42 = vector.load %arg8[%c0_20, %c0_21] : memref<1x1xf32, #tpu.memory_space<vmem>>, vector<1x1xf32>
    %43 = vector.broadcast %42 : vector<1x1xf32> to vector<1x256xf32>
    %44 = arith.addf %41, %43 : vector<1x256xf32>
    %45 = tpu.concatenate %29, %44 in 0 : vector<1x256xf32>, vector<1x256xf32> -> vector<2x256xf32>
    %c0_22 = arith.constant 0 : index
    %c0_23 = arith.constant 0 : index
    %46 = vector.load %arg9[%c0_22, %c0_23] : memref<2x256xf32, #tpu.memory_space<vmem>>, vector<2x256xf32>
    tpu.vector_store %arg9[%c0_22, %c0_23], %45 {strides = array<i32>} : memref<2x256xf32, #tpu.memory_space<vmem>>, vector<2x256xf32>,
    return
  }
  func.func @transform_0(%arg0: i32) -> (i32, i32) {
    %c0_i32 = arith.constant 0 : i32
    %c0_i32_0 = arith.constant 0 : i32
    return %c0_i32, %arg0 : i32, i32
  }
  func.func @transform_1(%arg0: i32) -> (i32, i32) {
    %c0_i32 = arith.constant 0 : i32
    %c0_i32_0 = arith.constant 0 : i32
    %c0_i32_1 = arith.constant 0 : i32
    return %c0_i32, %c0_i32_0 : i32, i32
  }
  func.func @transform_2(%arg0: i32) -> (i32, i32) {
    %c0_i32 = arith.constant 0 : i32
    %c0_i32_0 = arith.constant 0 : i32
    %c0_i32_1 = arith.constant 0 : i32
    return %c0_i32, %c0_i32_0 : i32, i32
  }
  func.func @transform_3(%arg0: i32) -> (i32, i32) {
    %c0_i32 = arith.constant 0 : i32
    %c0_i32_0 = arith.constant 0 : i32
    %c0_i32_1 = arith.constant 0 : i32
    return %c0_i32, %c0_i32_0 : i32, i32
  }
  func.func @transform_4(%arg0: i32) -> (i32, i32) {
    %c0_i32 = arith.constant 0 : i32
    %c0_i32_0 = arith.constant 0 : i32
    %c0_i32_1 = arith.constant 0 : i32
    return %c0_i32, %c0_i32_0 : i32, i32
  }
  func.func @transform_5(%arg0: i32) -> (i32, i32) {
    %c0_i32 = arith.constant 0 : i32
    %c0_i32_0 = arith.constant 0 : i32
    %c0_i32_1 = arith.constant 0 : i32
    return %c0_i32, %c0_i32_0 : i32, i32
  }
  func.func @transform_6(%arg0: i32) -> (i32, i32) {
    %c0_i32 = arith.constant 0 : i32
    %c0_i32_0 = arith.constant 0 : i32
    %c0_i32_1 = arith.constant 0 : i32
    return %c0_i32, %c0_i32_0 : i32, i32
  }
  func.func @transform_7(%arg0: i32) -> (i32, i32) {
    %c0_i32 = arith.constant 0 : i32
    %c0_i32_0 = arith.constant 0 : i32
    %c0_i32_1 = arith.constant 0 : i32
    return %c0_i32, %c0_i32_0 : i32, i32
  }
  func.func @transform_8(%arg0: i32) -> (i32, i32) {
    %c0_i32 = arith.constant 0 : i32
    %c0_i32_0 = arith.constant 0 : i32
    return %c0_i32, %arg0 : i32, i32
  }
}

</mosaic_0001>

<bundles_post_ra>
// kernel: tpu_custom_call.1
= control target key start
LH: loop header
LB: loop body
LE: loop exit
PB: predicated region body
PF: predicated region fallthrough
CT: control target
= control target key end

     0   :  { %s1522_s0 = inlined_call_operand.hbm [shape: f32[3,1000], index: 0, kind: input, shape index: {}]   ;;  %s1523_s1 = inlined_call_operand.vmem [shape: f32[64,3], index: 1, kind: input, shape index: {}]   ;;  %s1524_s2 = inlined_call_operand.vmem [shape: f32[64,64], index: 2, kind: input, shape index: {}]   ;;  %s1525_s3 = inlined_call_operand.vmem [shape: f32[16,64], index: 3, kind: input, shape index: {}]   ;;  %s1526_s4 = inlined_call_operand.vmem [shape: f32[16,16], index: 4, kind: input, shape index: {}]   ;;  %s1527_s5 = inlined_call_operand.vmem [shape: f32[16,1], index: 5, kind: input, shape index: {}]   ;;  %s1528_s6 = inlined_call_operand.vmem [shape: f32[16,1], index: 6, kind: input, shape index: {}]   ;;  %s1529_s7 = inlined_call_operand.<no memory space> [shape: f32[1,1], index: 7, kind: input, shape index: {}]   ;;  %s1530_s8 = inlined_call_operand.hbm [shape: f32[2,1000], index: 8, kind: output, shape index: {}]  }
   0x1   :  { %v13_v0 = vstv %s1529_s7 }
   0x2   :  { %14 = vst [vmem:[#allocation2] sm:$0x1] %v13_v0 }
   0x3   :  { %15 = vsyncpa [#allocation4], 0 }
   0x4   :  { %17 = vsyncpa [#allocation4 + $0x1], 0 }
   0x5   :  { %18 = vsyncpa [#allocation5], 0 }
   0x6   :  { %20 = vsyncpa [#allocation5 + $0x1], 0  ;;  %s1223_s29 = smov 0   ;;  %s1225_s30 = smov 0  }
   0x7   :  { %s1227_s9 = smov 0   ;;  %s1229_s10 = smov 0  }
   0x8 LB: > { %s1244_s7 = sadd.s32 4294967295, %s1170_s10   ;;  %s952_s11 = sadd.s32 4294967294, %s1170_s10   ;;  %s1170_s10 = sphi %s1229_s10, %s1541_s10   ;;  %s1166_s9 = sphi %s1227_s9, %s1540_s9   ;;  %s1162_s30 = sphi %s1225_s30, %s1539_s30   ;;  %s1158_s29 = sphi %s1223_s29, %s1538_s29  }
   0x9   : > { %s1248_s12 = sadd.s32 1, %s1170_s10   ;;  %s33_s13 = sadd.s32 1, %s1166_s9 }
   0xa   : > { %s30_s14 = ssub.s32 %s1170_s10, %s1248_s12  ;;  %p40_p0 = scmp.ne.s32.totalorder %s1166_s9, %s1162_s30 }
   0xb   : > { %p31_p1 = scmp.eq.s32.totalorder %s30_s14, 0  ;;  %p41_p2 = scmp.eq.s32.totalorder %s1170_s10, 0 }
   0xc   : > { %p46_p3 = scmp.ne.s32.totalorder %s1162_s30, %s1158_s29  ;;  %p47_p4 = scmp.eq.s32.totalorder %s1244_s7, 0 }
   0xd   : > { %s1260_s15 = scalar_select %p31_p1, %s1166_s9, %s33_s13  }
   0xe   : > { %p1262_p5 = por %p41_p2, %p40_p0  ;;  %p1266_p6 = por %p47_p4, %p46_p3 }
   0xf   : > { %1531 = sst [smem:[#allocation9_spill]] %s1260_s15  ;;  %p217_p7 = scmp.eq.s32.totalorder %s1244_s7, 3 }
  0x10   : > { %p223_p8 = scmp.eq.s32.totalorder %s952_s11, 3  ;;  %p1020_p9 = scmp.lt.s32.totalorder %s1170_s10, 4 }
  0x11   : > { %p1272_p10 = por %p217_p7, %p40_p0  ;;  %s264_s20 = sand.u32 1, %s1166_s9  }
  0x12   : > { %p1276_p11 = por %p223_p8, %p46_p3  ;;  %s990_s21 = sshll.u32 %s1170_s10, 3 }
  0x13   : > { %s955_s22 = sshll.u32 %s264_s20, 3  ;;  %s273_s25 = scalar_lea.hbm %s1522_s0, %s990_s21 }
  0x14   : > { %s275_s26 = sshll.u32 %s273_s25, 4  ;;  %s268_s27 = scalar_lea.vmem [#allocation3], %s955_s22  ;;  %s276_s26 = int_to_ptr.hbm [resolvable:$true] %s275_s26 }
  0x15   : > { %s277_s28 = sshll.u32 %s268_s27, 4  ;;  %p1287_p12 = pnand %p1020_p9, %p1262_p5  ;;  %s278_s28 = int_to_ptr.vmem [resolvable:$true] %s277_s28 }
  0x16   : > { %p958_p13 = scmp.ge.s32.totalorder %s1170_s10, 1  ;;  %p282_p0 = scmp.lt.s32.totalorder %s1170_s10, 5 }
  0x17   : > { %s265_s13 = scalar_lea.sflag [#allocation4], %s264_s20  ;;  %s1074_s14 = sshra.s32 %s276_s26, 4  ;;  %s1075_s14 = int_to_ptr.hbm [resolvable:$true] %s1074_s14 }
  0x18   : > { %s1076_s15 = scalar_lea.hbm %s1075_s14, 8  ;;  %p1078_p2 = pneg %p1287_p12 }
  0x19   : > { %p1077_p1 = scmp.ne.s32.totalorder %s1075_s14, %s1076_s15  ;;  %s1081_s16 = scalar_lea.hbm %s1522_s0, 32 }
  0x1a   : > { %p1082_p5 = scmp.lt.s32.totalorder %s1075_s14, %s1522_s0  ;;  %p1083_p7 = scmp.lt.s32.totalorder %s1081_s16, %s1076_s15 }
  0x1b   : > { %p1079_p3 = pnand %p1078_p2, %p1077_p1 }
  0x1c   : > { %p1084_p8 = por %p1083_p7, %p1082_p5 }
  0x1d   : > { %p1080_p4 = pneg %p1079_p3 }
  0x1f   : > { %p1085_p9 = pnand %p1084_p8, %p1080_p4 }
  0x21   : > { %1088 = shalt.err (!%p1085_p9)
}
  0x22   : > { %1015 = dma.hbm_to_vmem [thread:$0]  (!%p1287_p12), %s276_s26, 128, %s278_s28, %s265_s13  }
  0x23   : > { %p283_p1 = pnand %p958_p13, %p282_p0 }
  0x24   : > { %s1308_s20 = sand.u32 (!%p283_p1), 1, %s1162_s30  }
  0x25   : > { %286 = sbr.rel (%p283_p1) target bundleno = 732 (0x2dc), region = 52  ;;  %s959_s25 = sshll.u32 (!%p283_p1), %s1308_s20, 3 }
  0x26   : > { %s289_s15 = scalar_lea.sflag (!%p283_p1), [#allocation4], %s1308_s20  ;;  %s1312_s27 = scalar_lea.vmem (!%p283_p1), [#allocation3], %s959_s25 }
  0x2a   : > { %1149 = dma.done.wait (%p1266_p6), %s289_s15, 128  }
  0x2b   : > { %1151 = vsyncadd (%p1266_p6), %s289_s15, 4294967168  ;;  %v1172_v1 = vmov 0   ;;  %v1173_v2 = vmov 2   ;;  %v336_v3 = vld [vmem:[%s1523_s1 + $0x38] sm:$0xff]  ;;  %v335_v4 = vld [vmem:[%s1523_s1 + $0x30] sm:$0xff]  ;;  %v1174_v7 = vmov 1  }
  0x2c   : > { %1058 = vset.pattern.permute.xlu1 %v1172_v1  ;;  %1057 = vset.pattern.permute.xlu0 %v1172_v1  ;;  %v333_v5 = vld [vmem:[%s1523_s1 + $0x20] sm:$0xff]  ;;  %v334_v6 = vld [vmem:[%s1523_s1 + $0x28] sm:$0xff]  ;;  %v332_v9 = vld [vmem:[%s1523_s1 + $0x18] sm:$0xff]  ;;  %vm564_vm0 = vcmask 523264   ;;  %vm759_vm1 = vcmask 130048   ;;  %s960_s17 = sshll.u32 %s1308_s20, 2 }
  0x2d   : > { %1060 = vset.pattern.permute.xlu2 %v1173_v2  ;;  %374 = vperm.xlu0 %1057, %v336_v3   ;;  %v330_v8 = vld [vmem:[%s1523_s1 + $0x8] sm:$0xff]  ;;  %v331_v10 = vld [vmem:[%s1523_s1 + $0x10] sm:$0xff]  ;;  %v329_v11 = vld [vmem:[%s1523_s1] sm:$0xff]  ;;  %s991_s22 = sshll.u32 %s1244_s7, 2  ;;  %vm855_vm2 = vcmask 1040384   ;;  %s325_s25 = scalar_lea.vmem [#allocation6], %s960_s17 }
  0x2e   : > { %369 = vperm.xlu1 %1058, %v335_v4   ;;  %499 = vperm.xlu2 %1060, %v336_v3   ;;  %v328_v17 = vld [vmem:[%s1312_s27] sm:$0x77]  ;;  %s877_s24 = scalar_lea.hbm %s1530_s8, %s991_s22  ;;  %s879_s15 = sshll.u32 %s325_s25, 4  ;;  %vm861_vm3 = vcmask 1041408   ;;  %s880_s15 = int_to_ptr.vmem [resolvable:$true] %s879_s15 }
  0x2f   : > { %v432_v19 = vperm.slane %v328_v17, 1  ;;  %v378_v20 = vperm.slane %v328_v17, 0  ;;  %v433_v21 = vperm.slane %v328_v17, 5  ;;  %v379_v23 = vperm.slane %v328_v17, 4  ;;  %s881_s26 = sshll.u32 %s877_s24, 4  ;;  %s866_s7 = scalar_lea.sflag [#allocation5], %s1308_s20  ;;  %s882_s26 = int_to_ptr.hbm [resolvable:$true] %s881_s26 }
  0x30   : > { %v502_v26 = vperm.slane %v328_v17, 2  ;;  %v503_v29 = vperm.slane %v328_v17, 6  ;;  %s1118_s28 = sshra.s32 %s882_s26, 4  ;;  %s1124_s14 = scalar_lea.hbm %s1530_s8, 16  ;;  %s1119_s28 = int_to_ptr.hbm [resolvable:$true] %s1118_s28 }
  0x31   : > { %v1345_v25 = vperm.slane %v432_v19, 1  ;;  %v1347_v27 = vperm.slane %v378_v20, 0  ;;  %v1349_v28 = vperm.slane %v433_v21, 1  ;;  %v1351_v30 = vperm.slane %v379_v23, 0  ;;  %s1120_s11 = scalar_lea.hbm %s1119_s28, 4  ;;  %p1125_p0 = scmp.lt.s32.totalorder %s1119_s28, %s1530_s8 }
  0x32   : > { %v1356_v33 = vperm.slane %v502_v26, 2  ;;  %v1360_v36 = vperm.slane %v503_v29, 2  ;;  %p1121_p6 = scmp.ne.s32.totalorder %s1119_s28, %s1120_s11  ;;  %p1126_p2 = scmp.lt.s32.totalorder %s1124_s14, %s1120_s11 }
  0x34   : > { %p1122_p12 = pnand %p1121_p6, %p1272_p10  ;;  %p1127_p3 = por %p1126_p2, %p1125_p0 }
  0x35   : > { %359 = vperm.xlu0 %1057, %v333_v5  }
  0x36   : > { %1059 = vset.pattern.permute.xlu1 %v1174_v7  ;;  %1061 = vset.pattern.permute.xlu2 %v1172_v1  ;;  %p1123_p13 = pneg %p1122_p12 }
  0x37   : > { %425 = vperm.xlu1 %1059, %v335_v4   ;;  %364 = vperm.xlu2 %1061, %v334_v6  }
  0x38   : > { %p1128_p4 = pnand %p1127_p3, %p1123_p13 }
  0x3d   : > { %1063 = vset.pattern.permute.xlu0 %v1174_v7 }
  0x3e   : > { %429 = vperm.xlu0 %1063, %v336_v3  }
  0x3f   : > { %421 = vperm.xlu1 %1059, %v334_v6   ;;  %1062 = vset.pattern.permute.xlu2 %v1173_v2 }
  0x40   : > { %495 = vperm.xlu2 %1062, %v335_v4  }
  0x46   : > { %405 = vperm.xlu0 %1063, %v330_v8  }
  0x47   : > { %417 = vperm.xlu1 %1059, %v333_v5  }
  0x48   : > { %491 = vperm.xlu2 %1062, %v334_v6  }
  0x4e   : > { %1068 = vset.pattern.permute.xlu0 %v1173_v2 }
  0x4f   : > { %1064 = vset.pattern.permute.xlu1 %v1172_v1  ;;  %487 = vperm.xlu0 %1068, %v333_v5  }
  0x50   : > { %354 = vperm.xlu1 %1064, %v332_v9   ;;  %1065 = vset.pattern.permute.xlu2 %v1174_v7 }
  0x51   : > { %413 = vperm.xlu2 %1065, %v332_v9  }
  0x57   : > { %471 = vperm.xlu0 %1068, %v329_v11  }
  0x58   : > { %349 = vperm.xlu1 %1064, %v331_v10  }
  0x59   : > { %409 = vperm.xlu2 %1065, %v331_v10  }
  0x5f   : > { %1073 = vset.pattern.permute.xlu0 %v1172_v1 }
  0x60   : > { %1066 = vset.pattern.permute.xlu1 %v1173_v2 }
  0x61   : > { %483 = vperm.xlu1 %1066, %v332_v9   ;;  %1067 = vset.pattern.permute.xlu2 %v1172_v1 }
  0x62   : > { %344 = vperm.xlu2 %1067, %v330_v8  }
  0x69   : > { %479 = vperm.xlu1 %1066, %v331_v10  }
  0x6a   : > { %339 = vperm.xlu2 %1067, %v329_v11  }
  0x71   : > { %1069 = vset.pattern.permute.xlu1 %v1174_v7 }
  0x72   : > { %401 = vperm.xlu1 %1069, %v329_v11   ;;  %1070 = vset.pattern.permute.xlu2 %v1173_v2 }
  0x73   : > { %475 = vperm.xlu2 %1070, %v330_v8  }
  0x7a   : > { %1071 = vset.pattern.permute.xlu1 %v1172_v1 }
  0x7b   : > { %1072 = vset.pattern.permute.xlu2 %v1172_v1 }
  0x88   : > { %v500_v12 = vpop.permute.xlu2 %499 }
  0x89   : > { %v522_v49 = vmul.f32 %v1356_v33, %v500_v12  ;;  %v523_v53 = vmul.f32 %v1360_v36, %v500_v12 }
  0x91   : > { %v365_v13 = vpop.permute.xlu2 %364 }
  0x92   : > { %v394_v39 = vmul.f32 %v1347_v27, %v365_v13  ;;  %v395_v50 = vmul.f32 %v1351_v30, %v365_v13 }
  0x9a   : > { %v496_v14 = vpop.permute.xlu2 %495 }
  0x9b   : > { %v520_v40 = vmul.f32 %v1356_v33, %v496_v14  ;;  %v521_v51 = vmul.f32 %v1360_v36, %v496_v14 }
  0x9f   : > { %v375_v16 = vpop.permute.xlu0 %374 }
  0xa0   : > { %v370_v15 = vpop.permute.xlu1 %369  ;;  %v398_v37 = vmul.f32 %v1347_v27, %v375_v16  ;;  %v399_v38 = vmul.f32 %v1351_v30, %v375_v16 }
  0xa1   : > { %v396_v34 = vmul.f32 %v1347_v27, %v370_v15  ;;  %v397_v41 = vmul.f32 %v1351_v30, %v370_v15 }
  0xa2   : > { %v492_v18 = vpop.permute.xlu2 %491 }
  0xa3   : > { %v518_v58 = vmul.f32 %v1356_v33, %v492_v18  ;;  %v519_v62 = vmul.f32 %v1360_v36, %v492_v18 }
  0xa7   : > { %v1343_v22 = vpop.permute.xlu0 %359 }
  0xa8   : > { %v392_v11 = vmul.f32 %v1347_v27, %v1343_v22  ;;  %v393_v12 = vmul.f32 %v1351_v30, %v1343_v22 }
  0xa9   : > { %v426_v24 = vpop.permute.xlu1 %425 }
  0xaa   : > { %v450_v31 = vmul.f32 %v1345_v25, %v426_v24  ;;  %v451_v35 = vmul.f32 %v1349_v28, %v426_v24 }
  0xab   : > { %v1354_v32 = vpop.permute.xlu2 %413 }
  0xac   : > { %v466_v42 = vadd.f32 %v450_v31, %v396_v34  ;;  %v467_v52 = vadd.f32 %v451_v35, %v397_v41  ;;  %v444_v34 = vmul.f32 %v1345_v25, %v1354_v32  ;;  %v445_v35 = vmul.f32 %v1349_v28, %v1354_v32 }
  0xae   : > { %v536_v61 = vadd.f32 %v520_v40, %v466_v42  ;;  %v537_v63 = vadd.f32 %v521_v51, %v467_v52 }
  0xb0   : > { %v430_v44 = vpop.permute.xlu0 %429  ;;  %v552_v7 = vmax.f32 %v536_v61, 0.0  ;;  %v553_v8 = vmax.f32 %v537_v63, 0.0 }
  0xb1   : > { %v422_v43 = vpop.permute.xlu1 %421  ;;  %v452_v47 = vmul.f32 %v1345_v25, %v430_v44  ;;  %v453_v48 = vmul.f32 %v1349_v28, %v430_v44 }
  0xb2   : > { %v448_v45 = vmul.f32 %v1345_v25, %v422_v43  ;;  %v449_v46 = vmul.f32 %v1349_v28, %v422_v43 }
  0xb3   : > { %v468_v55 = vadd.f32 %v452_v47, %v398_v37  ;;  %v469_v56 = vadd.f32 %v453_v48, %v399_v38  ;;  %v1377_v0 = vpop.permute.xlu2 %409 }
  0xb4   : > { %v464_v54 = vadd.f32 %v448_v45, %v394_v39  ;;  %v465_v57 = vadd.f32 %v449_v46, %v395_v50 }
  0xb5   : > { %v538_v59 = vadd.f32 %v522_v49, %v468_v55  ;;  %v539_v60 = vadd.f32 %v523_v53, %v469_v56  ;;  %v443_v55 = vmul.f32 %v1349_v28, %v1377_v0 }
  0xb6   : > { %v534_v3 = vadd.f32 %v518_v58, %v464_v54  ;;  %v535_v6 = vadd.f32 %v519_v62, %v465_v57  ;;  %v442_v54 = vmul.f32 %v1345_v25, %v1377_v0 }
  0xb7   : > { %v554_v1 = vmax.f32 %v538_v59, 0.0  ;;  %v555_v2 = vmax.f32 %v539_v60, 0.0 }
  0xb8   : > { %v406_v5 = vpop.permute.xlu0 %405  ;;  %v550_v9 = vmax.f32 %v534_v3, 0.0  ;;  %v551_v10 = vmax.f32 %v535_v6, 0.0 }
  0xb9   : > { %v418_v4 = vpop.permute.xlu1 %417  ;;  %597 = vmatpush.msra.mxu0 %v554_v1  ;;  %992 = vmatpush.msra.mxu2 %v554_v1  ;;  %v440_v44 = vmul.f32 %v1345_v25, %v406_v5  ;;  %v441_v48 = vmul.f32 %v1349_v28, %v406_v5 }
  0xba   : > { %638 = vmatpush.msra.mxu1 %v555_v2  ;;  %1000 = vmatpush.msra.mxu3 %v555_v2  ;;  %v446_v13 = vmul.f32 %v1345_v25, %v418_v4  ;;  %v447_v14 = vmul.f32 %v1349_v28, %v418_v4 }
  0xbb   : > { %598 = vmatpush.msra.mxu0 %v552_v7  ;;  %993 = vmatpush.msra.mxu2 %v552_v7 }
  0xbc   : > { %639 = vmatpush.msra.mxu1 %v553_v8  ;;  %1001 = vmatpush.msra.mxu3 %v553_v8  ;;  %v462_v17 = vadd.f32 %v446_v13, %v392_v11  ;;  %v463_v18 = vadd.f32 %v447_v14, %v393_v12  ;;  %v345_v19 = vpop.permute.xlu2 %344 }
  0xbd   : > { %599 = vmatpush.msra.mxu0 %v550_v9  ;;  %994 = vmatpush.msra.mxu2 %v550_v9  ;;  %v386_v45 = vmul.f32 %v1347_v27, %v345_v19  ;;  %v387_v32 = vmul.f32 %v1351_v30, %v345_v19 }
  0xbe   : > { %640 = vmatpush.msra.mxu1 %v551_v10  ;;  %1002 = vmatpush.msra.mxu3 %v551_v10 }
  0xbf   : > { %v456_v56 = vadd.f32 %v440_v44, %v386_v45  ;;  %v457_v58 = vadd.f32 %v441_v48, %v387_v32 }
  0xc1   : > { %v488_v16 = vpop.permute.xlu0 %487 }
  0xc2   : > { %v355_v15 = vpop.permute.xlu1 %354  ;;  %v516_v20 = vmul.f32 %v1356_v33, %v488_v16  ;;  %v517_v21 = vmul.f32 %v1360_v36, %v488_v16 }
  0xc3   : > { %v390_v37 = vmul.f32 %v1347_v27, %v355_v15  ;;  %v391_v38 = vmul.f32 %v1351_v30, %v355_v15 }
  0xc4   : > { %v532_v23 = vadd.f32 %v516_v20, %v462_v17  ;;  %v533_v24 = vadd.f32 %v517_v21, %v463_v18  ;;  %v340_v31 = vpop.permute.xlu2 %339 }
  0xc5   : > { %v460_v40 = vadd.f32 %v444_v34, %v390_v37  ;;  %v461_v41 = vadd.f32 %v445_v35, %v391_v38  ;;  %v384_v9 = vmul.f32 %v1347_v27, %v340_v31  ;;  %v385_v12 = vmul.f32 %v1351_v30, %v340_v31 }
  0xc6   : > { %v548_v26 = vmax.f32 %v532_v23, 0.0  ;;  %v549_v22 = vmax.f32 %v533_v24, 0.0  ;;  %v559_v23 = vld [vmem:[%s1524_s2 + $0x18] sm:$0xff]  ;;  %v560_v24 = vld [vmem:[%s1524_s2 + $0x20] sm:$0xff] }
  0xc8   : > { %600 = vmatpush.msra.mxu0 %v548_v26  ;;  %995 = vmatpush.msra.mxu2 %v548_v26  ;;  %v561_v26 = vld [vmem:[%s1524_s2 + $0x28] sm:$0xff] }
  0xc9   : > { %641 = vmatpush.msra.mxu1 %v549_v22  ;;  %1003 = vmatpush.msra.mxu3 %v549_v22  ;;  %v472_v10 = vpop.permute.xlu0 %471 }
  0xca   : > { %v350_v29 = vpop.permute.xlu1 %349  ;;  %v508_v15 = vmul.f32 %v1356_v33, %v472_v10  ;;  %v509_v16 = vmul.f32 %v1360_v36, %v472_v10 }
  0xcb   : > { %v388_v50 = vmul.f32 %v1347_v27, %v350_v29  ;;  %v389_v51 = vmul.f32 %v1351_v30, %v350_v29  ;;  %v556_v30 = vld [vmem:[%s1524_s2] sm:$0xff] }
  0xcd   : > { %v476_v49 = vpop.permute.xlu2 %475  ;;  %v458_v61 = vadd.f32 %v442_v54, %v388_v50  ;;  %v459_v62 = vadd.f32 %v443_v55, %v389_v51 }
  0xce   : > { %v510_v57 = vmul.f32 %v1356_v33, %v476_v49  ;;  %v511_v59 = vmul.f32 %v1360_v36, %v476_v49 }
  0xd0   : > { %v526_v0 = vadd.f32 %v510_v57, %v456_v56  ;;  %v527_v4 = vadd.f32 %v511_v59, %v457_v58 }
  0xd2   : > { %v542_v7 = vmax.f32 %v526_v0, 0.0  ;;  %v543_v8 = vmax.f32 %v527_v4, 0.0  ;;  %v748_v0 = vld [vmem:[%s1527_s5 + $0x8] sm:$0xff]  ;;  %v816_v4 = vld [vmem:[%s1528_s6] sm:$0xff] }
  0xd3   : > { %v484_v39 = vpop.permute.xlu1 %483  ;;  %756 = vperm.xlu2 %1072, %v748_v0  }
  0xd4   : > { %v514_v42 = vmul.f32 %v1356_v33, %v484_v39  ;;  %v515_v43 = vmul.f32 %v1360_v36, %v484_v39 }
  0xd6   : > { %v530_v46 = vadd.f32 %v514_v42, %v460_v40  ;;  %v531_v47 = vadd.f32 %v515_v43, %v461_v41 }
  0xd8   : > { %v546_v52 = vmax.f32 %v530_v46, 0.0  ;;  %v547_v53 = vmax.f32 %v531_v47, 0.0 }
  0xda   : > { %601 = vmatpush.msra.mxu0 %v546_v52  ;;  %996 = vmatpush.msra.mxu2 %v546_v52 }
  0xdb   : > { %642 = vmatpush.msra.mxu1 %v547_v53  ;;  %1004 = vmatpush.msra.mxu3 %v547_v53  ;;  %v480_v60 = vpop.permute.xlu1 %479 }
  0xdc   : > { %v512_v63 = vmul.f32 %v1356_v33, %v480_v60  ;;  %v513_v1 = vmul.f32 %v1360_v36, %v480_v60  ;;  %v563_v33 = vld [vmem:[%s1524_s2 + $0x38] sm:$0xff]  ;;  %v558_v36 = vld [vmem:[%s1524_s2 + $0x10] sm:$0xff] }
  0xde   : > { %v528_v2 = vadd.f32 %v512_v63, %v458_v61  ;;  %v529_v3 = vadd.f32 %v513_v1, %v459_v62  ;;  %v687_v63 = vld [vmem:[%s1525_s3] sm:$0xff]  ;;  %v688_v1 = vld [vmem:[%s1525_s3 + $0x8] sm:$0xff] }
  0xe0   : > { %v544_v5 = vmax.f32 %v528_v2, 0.0  ;;  %v545_v6 = vmax.f32 %v529_v3, 0.0  ;;  %v747_v2 = vld [vmem:[%s1527_s5] sm:$0xff] }
  0xe1   : > { %v846_v3 = vld [vmem:[#allocation2] sm:$0x1]  ;;  %751 = vperm.xlu1 %1071, %v747_v2  }
  0xe2   : > { %602 = vmatpush.msra.mxu0 %v544_v5  ;;  %997 = vmatpush.msra.mxu2 %v544_v5  ;;  %v817_v5 = vld [vmem:[%s1528_s6 + $0x8] sm:$0xff] }
  0xe3   : > { %643 = vmatpush.msra.mxu1 %v545_v6  ;;  %1005 = vmatpush.msra.mxu3 %v545_v6 }
  0xe4   : > { %v402_v11 = vpop.permute.xlu1 %401  ;;  %603 = vmatpush.msra.mxu0 %v542_v7  ;;  %998 = vmatpush.msra.mxu2 %v542_v7 }
  0xe5   : > { %v438_v13 = vmul.f32 %v1345_v25, %v402_v11  ;;  %v439_v14 = vmul.f32 %v1349_v28, %v402_v11  ;;  %644 = vmatpush.msra.mxu1 %v543_v8  ;;  %1006 = vmatpush.msra.mxu3 %v543_v8  ;;  %v562_v25 = vld [vmem:[%s1524_s2 + $0x30] sm:$0xff]  ;;  %v557_v28 = vld [vmem:[%s1524_s2 + $0x8] sm:$0xff] }
  0xe6   : > { %849 = vperm.xlu0 %1073, %v846_v3   ;;  %825 = vperm.xlu2 %1072, %v817_v5  }
  0xe7   : > { %v454_v17 = vadd.f32 %v438_v13, %v384_v9  ;;  %v455_v18 = vadd.f32 %v439_v14, %v385_v12  ;;  %v745_v14 = vld [vmem:[%s1526_s4] sm:$0xff] }
  0xe9   : > { %v524_v19 = vadd.f32 %v508_v15, %v454_v17  ;;  %v525_v27 = vadd.f32 %v509_v16, %v455_v18  ;;  %820 = vperm.xlu1 %1071, %v816_v4   ;;  %v746_v15 = vld [vmem:[%s1526_s4 + $0x8] sm:$0xff] }
  0xeb   : > { %v540_v20 = vmax.f32 %v524_v19, 0.0  ;;  %v541_v21 = vmax.f32 %v525_v27, 0.0 }
  0xed   : > { %604 = vmatpush.msra.mxu0 %v540_v20  ;;  %999 = vmatpush.msra.mxu2 %v540_v20 }
  0xee   : > { %645 = vmatpush.msra.mxu1 %v541_v21  ;;  %1007 = vmatpush.msra.mxu3 %v541_v21 }
  0xef   : > { %961 = vmatmul.msk.f32.vlgmr.msra.gmra.mxu0 %vm564_vm0, %v556_v30  ;;  %969 = vmatmul.msk.f32.vlgmr.msra.gmra.mxu1 %vm564_vm0, %v556_v30 }
  0xf0   : > { %975 = vmatmul.msk.f32.vlgmr.msra.gmra.mxu3 %vm564_vm0, %v562_v25  ;;  %967 = vmatmul.msk.f32.vlgmr.msra.gmra.mxu2 %vm564_vm0, %v562_v25 }
  0xf7   : > { %962 = vmatmul.msk.f32.gmra.mxu0 %vm564_vm0, %v557_v28  ;;  %970 = vmatmul.msk.f32.gmra.mxu1 %vm564_vm0, %v557_v28 }
  0xf8   : > { %976 = vmatmul.msk.f32.gmra.mxu3 %vm564_vm0, %v563_v33  ;;  %968 = vmatmul.msk.f32.gmra.mxu2 %vm564_vm0, %v563_v33 }
  0xff   : > { %963 = vmatmul.msk.f32.gmra.mxu0 %vm564_vm0, %v558_v36  ;;  %971 = vmatmul.msk.f32.gmra.mxu1 %vm564_vm0, %v558_v36 }
 0x107   : > { %964 = vmatmul.msk.f32.gmra.mxu0 %vm564_vm0, %v559_v23  ;;  %972 = vmatmul.msk.f32.gmra.mxu1 %vm564_vm0, %v559_v23 }
 0x10f   : > { %965 = vmatmul.msk.f32.gmra.mxu0 %vm564_vm0, %v560_v24  ;;  %973 = vmatmul.msk.f32.gmra.mxu1 %vm564_vm0, %v560_v24 }
 0x117   : > { %966 = vmatmul.msk.f32.gmra.mxu0 %vm564_vm0, %v561_v26  ;;  %974 = vmatmul.msk.f32.gmra.mxu1 %vm564_vm0, %v561_v26 }
 0x12d   : > { %v757_v19 = vpop.permute.xlu2 %756 }
 0x153   : > { %v752_v16 = vpop.permute.xlu1 %751 }
 0x15b   : > { %v821_v23 = vpop.permute.xlu1 %820 }
 0x16c   : > { %v606_v22 = vpop.f32.mrf.mxu0  ;;  %v647_v29 = vpop.f32.mrf.mxu1 }
 0x16d   : > { %v671_v61 = vmax.f32 %v606_v22, 0.0  ;;  %v672_v62 = vmax.f32 %v647_v29, 0.0  ;;  %v826_v22 = vpop.permute.xlu2 %825 }
 0x173   : > { %v665_v31 = vpop.f32.mrf.mxu3  ;;  %v624_v34 = vpop.f32.mrf.mxu2 }
 0x174   : > { %v609_v35 = vpop.f32.mrf.mxu0  ;;  %v650_v37 = vpop.f32.mrf.mxu1  ;;  %v684_v42 = vmax.f32 %v665_v31, 0.0  ;;  %v683_v43 = vmax.f32 %v624_v34, 0.0 }
 0x175   : > { %v673_v59 = vmax.f32 %v609_v35, 0.0  ;;  %v674_v60 = vmax.f32 %v650_v37, 0.0 }
 0x17b   : > { %v668_v38 = vpop.f32.mrf.mxu3  ;;  %v627_v39 = vpop.f32.mrf.mxu2 }
 0x17c   : > { %v612_v40 = vpop.f32.mrf.mxu0  ;;  %v653_v41 = vpop.f32.mrf.mxu1  ;;  %v686_v44 = vmax.f32 %v668_v38, 0.0  ;;  %v685_v45 = vmax.f32 %v627_v39, 0.0 }
 0x17d   : > { %v675_v57 = vmax.f32 %v612_v40, 0.0  ;;  %v676_v58 = vmax.f32 %v653_v41, 0.0 }
 0x17e   : > { %726 = vmatpush.msrb.mxu3 %v686_v44  ;;  %703 = vmatpush.msrb.mxu2 %v685_v45  ;;  %v850_v45 = vpop.permute.xlu0 %849 }
 0x180   : > { %727 = vmatpush.msrb.mxu3 %v684_v42  ;;  %704 = vmatpush.msrb.mxu2 %v683_v43 }
 0x184   : > { %v615_v46 = vpop.f32.mrf.mxu0  ;;  %v656_v47 = vpop.f32.mrf.mxu1 }
 0x185   : > { %v677_v55 = vmax.f32 %v615_v46, 0.0  ;;  %v678_v56 = vmax.f32 %v656_v47, 0.0 }
 0x18c   : > { %v618_v48 = vpop.f32.mrf.mxu0  ;;  %v659_v32 = vpop.f32.mrf.mxu1 }
 0x18d   : > { %v679_v53 = vmax.f32 %v618_v48, 0.0  ;;  %v680_v54 = vmax.f32 %v659_v32, 0.0 }
 0x194   : > { %v621_v49 = vpop.f32.mrf.mxu0  ;;  %v662_v50 = vpop.f32.mrf.mxu1 }
 0x195   : > { %v681_v51 = vmax.f32 %v621_v49, 0.0  ;;  %v682_v52 = vmax.f32 %v662_v50, 0.0  ;;  %v852_v49 = vperm.slane %v850_v45, 0 }
 0x197   : > { %705 = vmatpush.msrb.mxu2 %v681_v51  ;;  %728 = vmatpush.msrb.mxu3 %v682_v52 }
 0x199   : > { %706 = vmatpush.msrb.mxu2 %v679_v53  ;;  %729 = vmatpush.msrb.mxu3 %v680_v54 }
 0x19b   : > { %707 = vmatpush.msrb.mxu2 %v677_v55  ;;  %730 = vmatpush.msrb.mxu3 %v678_v56 }
 0x19d   : > { %708 = vmatpush.msrb.mxu2 %v675_v57  ;;  %731 = vmatpush.msrb.mxu3 %v676_v58 }
 0x19f   : > { %709 = vmatpush.msrb.mxu2 %v673_v59  ;;  %732 = vmatpush.msrb.mxu3 %v674_v60 }
 0x1a1   : > { %710 = vmatpush.msrb.mxu2 %v671_v61  ;;  %733 = vmatpush.msrb.mxu3 %v672_v62 }
 0x1a2   : > { %977 = vmatmul.msk.f32.vlgmr.msrb.gmra.mxu2 %vm564_vm0, %v687_v63  ;;  %979 = vmatmul.msk.f32.vlgmr.msrb.gmra.mxu3 %vm564_vm0, %v687_v63 }
 0x1aa   : > { %978 = vmatmul.msk.f32.gmra.mxu2 %vm564_vm0, %v688_v1  ;;  %980 = vmatmul.msk.f32.gmra.mxu3 %vm564_vm0, %v688_v1 }
 0x225   : > { %v1477_v6 = vpop.f32.mrf.mxu2  ;;  %v1479_v7 = vpop.f32.mrf.mxu3 }
 0x226   : > { %v741_v12 = vmax.f32 %v1477_v6, 0.0  ;;  %v742_v13 = vmax.f32 %v1479_v7, 0.0 }
 0x22d   : > { %v715_v8 = vpop.f32.mrf.mxu2  ;;  %v738_v9 = vpop.f32.mrf.mxu3 }
 0x22e   : > { %v743_v10 = vmax.f32 %v715_v8, 0.0  ;;  %v744_v11 = vmax.f32 %v738_v9, 0.0 }
 0x230   : > { %780 = vmatpush.msra.mxu2 %v743_v10  ;;  %803 = vmatpush.msra.mxu3 %v744_v11 }
 0x232   : > { %781 = vmatpush.msra.mxu2 %v741_v12  ;;  %804 = vmatpush.msra.mxu3 %v742_v13 }
 0x233   : > { %981 = vmatmul.msk.f32.vlgmr.msra.gmra.mxu2 %vm759_vm1, %v745_v14  ;;  %983 = vmatmul.msk.f32.vlgmr.msra.gmra.mxu3 %vm759_vm1, %v745_v14 }
 0x23b   : > { %982 = vmatmul.msk.f32.gmra.mxu2 %vm759_vm1, %v746_v15  ;;  %984 = vmatmul.msk.f32.gmra.mxu3 %vm759_vm1, %v746_v15 }
 0x2b6   : > { %v783_v17 = vpop.f32.mrf.mxu2  ;;  %v806_v18 = vpop.f32.mrf.mxu3 }
 0x2b7   : > { %v784_v27 = vadd.f32 %v783_v17, %v752_v16  ;;  %v807_v20 = vadd.f32 %v806_v18, %v752_v16 }
 0x2b9   : > { %v812_v25 = vmax.f32 %v784_v27, 0.0  ;;  %v813_v28 = vmax.f32 %v807_v20, 0.0 }
 0x2bb   : > { %v828_v29 = vmul.f32 %v821_v23, %v812_v25  ;;  %v829_v31 = vmul.f32 %v821_v23, %v813_v28 }
 0x2be   : > { %v786_v21 = vpop.f32.mrf.mxu2  ;;  %v809_v30 = vpop.f32.mrf.mxu3 }
 0x2bf   : > { %v787_v33 = vadd.f32 %v786_v21, %v757_v19  ;;  %v810_v36 = vadd.f32 %v809_v30, %v757_v19 }
 0x2c1   : > { %v814_v24 = vmax.f32 %v787_v33, 0.0  ;;  %v815_v26 = vmax.f32 %v810_v36, 0.0 }
 0x2c3   : > { %v830_v34 = vmul.f32 %v826_v22, %v814_v24  ;;  %v831_v35 = vmul.f32 %v826_v22, %v815_v26 }
 0x2c5   : > { %v832_v37 = vadd.f32 %v830_v34, %v828_v29  ;;  %v839_v38 = vadd.f32 %v831_v35, %v829_v31 }
 0x2c7   : > { %v833_v39 = vrot.slane %v832_v37, 4  ;;  %v840_v40 = vrot.slane %v839_v38, 4 }
 0x2c9   : > { %v834_v41 = vadd.f32 %v833_v39, %v832_v37  ;;  %v841_v42 = vadd.f32 %v840_v40, %v839_v38 }
 0x2cb   : > { %v835_v43 = vrot.slane %v834_v41, 2  ;;  %v842_v44 = vrot.slane %v841_v42, 2 }
 0x2cd   : > { %v836_v46 = vadd.f32 %v835_v43, %v834_v41  ;;  %v843_v47 = vadd.f32 %v842_v44, %v841_v42 }
 0x2cf   : > { %v837_v48 = vrot.slane %v836_v46, 1  ;;  %v844_v32 = vrot.slane %v843_v47, 1 }
 0x2d1   : > { %v838_v50 = vadd.f32 %v837_v48, %v836_v46  ;;  %v845_v51 = vadd.f32 %v844_v32, %v843_v47 }
 0x2d3   : > { %v853_v52 = vadd.f32 %v852_v49, %v838_v50  ;;  %v854_v53 = vadd.f32 %v852_v49, %v845_v51 }
 0x2d5   : > { %v857_v54 = vsel %vm855_vm2, %v742_v13, %v854_v53  ;;  %v856_v56 = vsel %vm855_vm2, %v741_v12, %v853_v52 }
 0x2d6   : > { %v860_v55 = vrot.slane %v857_v54, 6 }
 0x2d8   : > { %v862_v57 = vsel %vm861_vm3, %v856_v56, %v860_v55 }
 0x2d9   : > { %864 = vst [vmem:[%s325_s25] sm:$0xf] %v862_v57 }
 0x2da   : > { %1131 = shalt.err (!%p1128_p4)
}
 0x2db   : > { %1010 = dma.vmem_to_hbm [thread:$0]  (%p1272_p10), %s880_s15, 64, %s882_s26, %s866_s7  }
 0x2dc PF: > { %p1021_p5 = scmp.ge.s32.totalorder %s1170_s10, 2  ;;  %s893_s20 = sand.u32 1, %s1158_s29  }
 0x2dd   : > { %s894_s22 = scalar_lea.sflag [#allocation5], %s893_s20 }
 0x2de   : > { %p1017_p7 = pnand %p1021_p5, %p1276_p11 }
 0x2e0   : > { %p1018_p8 = pneg %p1017_p7 }
 0x2e2   : > { %1153 = dma.done.wait (%p1018_p8), %s894_s22, 64  }
 0x2e3   : > { %1155 = vsyncadd (%p1018_p8), %s894_s22, 4294967232  ;;  %s1537_s16 = sld [smem:[#allocation9_spill]]  ;;  %p23_p9 = scmp.ge.s32.totalorder %s1248_s12, 6  }
 0x2e4   : > { %s1538_s29 = smov %s1162_s30  ;;  %s1539_s30 = smov %s1166_s9 }
 0x2e5   : > { %s1541_s10 = smov %s1248_s12  ;;  %25 = sbr.rel (!%p23_p9) target bundleno = 8 (0x8), region = 97 }
 0x2e9   : > { %s1540_s9 = smov %s1537_s16 }
 0x2ea   :  { %900 = vsyncpa [#allocation4], 1 }
 0x2eb   :  { %902 = vsyncpa [#allocation4 + $0x1], 1 }
 0x2ec   :  { %903 = vsyncpa [#allocation5], 1 }
 0x2ed   :  { %905 = vsyncpa [#allocation5 + $0x1], 1 }

</bundles_post_ra>
